<compile_context>
chip_gen: v5e
topology: v5e:2x2
jax: 0.10.0
libtpu: 0.0.40
codegen_flags: <defaults>
</compile_context>

<pallas_src>
import math
from functools import partial

import jax
import jax.numpy as jnp
from jax.experimental import pallas as pl
from jax.experimental.pallas import tpu as pltpu


# ---------------------------------------------------------------------------
# Fused Pallas kernel: rollout (object-dynamics MLP) + rollout classifier
# ---------------------------------------------------------------------------
def _fused_rollout_cls_kernel(x_ref, keep_ref, w1_ref, b1_ref, w2_ref, b2_ref,
                              cw1_ref, cb1_ref, cw2_ref, cb2_ref, out_ref,
                              *, n_hist, n_fwd, n_slices, batch, nobj):
    """
    x_ref:    (Nobj, T*B, D) f32   raw time-major input, rows (t, b) per object
    keep_ref: (M, 1) f32           keep[o] / (T_total * n_kept) per slab row
    w1_ref:   (n_hist*D, H1) bf16  fused-K dynamics layer-1 weights (original layout)
    b1_ref:   (1, H1) f32, w2_ref: (H1, D) bf16, b2_ref: (1, D) f32
    cw1_ref:  (D, H2) bf16, cb1_ref: (1, H2) f32
    cw2_ref:  (H2, 128) bf16 (col 0 real), cb2_ref: (1, 128) f32 (col 0 real)
    out_ref:  (Bp, 128) f32        lane-dense logit slab (col 0 = logit)

    Slab rows are ordered (object, slice, batch); M = Nobj * n_slices * B.
    """
    B = batch
    Bp = n_slices * B
    M = Bp * nobj
    D = x_ref.shape[-1]
    H1 = b1_ref.shape[-1]

    # ---- One-time history-window formation from the raw time-major input -----
    # chunk j (oldest = 0): per object, frames j .. j+n_slices-1 -> rows (slice, b);
    # objects stacked outermost so pooling later is a few contiguous slices.
    chunks_f32 = []
    for j in range(n_hist):
        pieces = [x_ref[o, j * B:(j + n_slices) * B, :] for o in range(nobj)]
        chunks_f32.append(pieces[0] if nobj == 1 else jnp.concatenate(pieces, axis=0))

    # Cached bf16 history: each frame is cast to bf16 exactly once (no per-step recasts).
    hist = tuple(c.astype(jnp.bfloat16) for c in chunks_f32)
    last_f32 = chunks_f32[-1]                       # most recent frame, f32 residual path
    fsum = chunks_f32[0]
    for j in range(1, n_hist):
        fsum = fsum + chunks_f32[j]                 # online pooled sum over the history

    # Hoisted weight loads / bias broadcasts (JAX does not CSE broadcast_in_dim).
    w1 = w1_ref[...]
    w2 = w2_ref[...]
    b1_b = jnp.broadcast_to(b1_ref[...], (M, H1))
    b2_b = jnp.broadcast_to(b2_ref[...], (M, D))

    # ---- Rollout: ONE fused K = n_hist*D MXU dot per step ---------------------
    # (history shift = tuple rotation + one lane-axis concat: XLU/VPU filler, off MXU).
    for _ in range(n_fwd):
        slab = hist[0] if n_hist == 1 else jnp.concatenate(hist, axis=-1)   # (M, n_hist*D) bf16
        h = jnp.dot(slab, w1, preferred_element_type=jnp.float32) + b1_b
        h = jnp.maximum(h, 0.0)
        delta = jnp.dot(h.astype(jnp.bfloat16), w2,
                        preferred_element_type=jnp.float32) + b2_b
        pred = last_f32 + delta                      # residual on most recent frame (f32)
        fsum = fsum + pred
        hist = hist[1:] + (pred.astype(jnp.bfloat16),)
        last_f32 = pred

    # ---- Masked mean pool over (time, objects) --------------------------------
    # keep_ref already folds keep[o] and 1/(T_total*n_kept) in f32 (exact scale);
    # padded objects are zeroed here so they never reach the classifier.
    masked = fsum * keep_ref[...]                    # (M, D) * (M, 1)
    pooled = masked[0:Bp, :]
    for o in range(1, nobj):
        pooled = pooled + masked[o * Bp:(o + 1) * Bp, :]   # contiguous sublane slices

    # ---- Rollout classifier MLP; lane-dense 128-wide head (col 0 = logit) -----
    hc = jnp.dot(pooled.astype(jnp.bfloat16), cw1_ref[...],
                 preferred_element_type=jnp.float32) + cb1_ref[...]
    hc = jnp.maximum(hc, 0.0)
    out_ref[...] = jnp.dot(hc.astype(jnp.bfloat16), cw2_ref[...],
                           preferred_element_type=jnp.float32) + cb2_ref[...]


# ---------------------------------------------------------------------------
# Jitted device pipeline: mask + cheap layout prep + single pallas_call
# ---------------------------------------------------------------------------
@partial(jax.jit, static_argnames=("n_hist", "n_fwd", "nslices", "strip_padding"))
def _forward_impl(tensor, dyn_params, cls_params, *, n_hist, n_fwd, nslices, strip_padding):
    B, T, Nobj, D = tensor.shape
    n_slices = T - n_hist + 1
    if nslices > 0:
        n_slices = min(n_slices, nslices)
    Bp = n_slices * B
    M = Bp * Nobj
    T_total = n_hist + n_fwd

    # Device-side keep mask (matches torch strip_padding: plain feature sum == 0).
    if strip_padding:
        keep = (jnp.sum(tensor, axis=(0, 1, 3)) != 0).astype(jnp.float32)     # (Nobj,)
    else:
        keep = jnp.ones((Nobj,), jnp.float32)
    n_kept = jnp.maximum(jnp.sum(keep), 1.0)

    # Per-row keep mask with the mean-pool scale folded in (f32 -> exact scale).
    # Slab rows are ordered (object, slice, batch) -> keep[o] repeated Bp times.
    keep_rows = (jnp.repeat(keep, Bp) / (T_total * n_kept))[:, None]          # (M, 1)

    # Raw time-major, per-object-flattened input (no sliding-window duplication in HBM;
    # the kernel forms the overlapping windows itself with static ref slices).
    x_src = jnp.transpose(tensor, (2, 1, 0, 3)).reshape(Nobj, T * B, D)

    w1, b1, w2, b2 = dyn_params
    cw1, cb1, cw2, cb2 = cls_params
    H1 = w1.shape[1]
    H2 = cw1.shape[1]

    # MXU operands as bf16 (f32 accumulation in-kernel); biases stay f32.
    w1_k = w1.astype(jnp.bfloat16)                  # (n_hist*D, H1) fused-K layout
    w2_k = w2.astype(jnp.bfloat16)
    cw1_k = cw1.astype(jnp.bfloat16)
    # Pad the 1-wide classifier head to a lane-dense 128-wide slab.
    cw2_k = jnp.zeros((H2, 128), jnp.float32).at[:, :1].set(cw2).astype(jnp.bfloat16)
    cb2_k = jnp.zeros((1, 128), jnp.float32).at[:, :1].set(cb2)

    # Advisory cost estimate so XLA schedules this µs-scale custom call sensibly.
    flops = (2 * n_fwd * M * (n_hist * D * H1 + H1 * D)
             + 2 * Bp * (D * H2 + H2 * 128) + 2 * M * D)
    bytes_accessed = (4 * (x_src.size + keep_rows.size + b1.size + b2.size
                           + cb1.size + 128 + Bp * 128)
                      + 2 * (w1.size + w2.size + cw1.size + H2 * 128))

    kernel = partial(_fused_rollout_cls_kernel, n_hist=n_hist, n_fwd=n_fwd,
                     n_slices=n_slices, batch=B, nobj=Nobj)

    # TODO(synk): at real PHYRE batch sizes, tile M over a "parallel" grid axis (uses both
    # v7x TensorCores) and size the tile against v7x's 64 MiB VMEM; grid=(1,) is right here.
    out = pl.pallas_call(
        kernel,
        out_shape=jax.ShapeDtypeStruct((Bp, 128), jnp.float32),
        grid=(1,),
        in_specs=[
            pl.BlockSpec((Nobj, T * B, D), lambda i: (0, 0, 0)),
            pl.BlockSpec((M, 1), lambda i: (0, 0)),
            pl.BlockSpec((n_hist * D, H1), lambda i: (0, 0)),
            pl.BlockSpec((1, H1), lambda i: (0, 0)),
            pl.BlockSpec((H1, D), lambda i: (0, 0)),
            pl.BlockSpec((1, D), lambda i: (0, 0)),
            pl.BlockSpec((D, H2), lambda i: (0, 0)),
            pl.BlockSpec((1, H2), lambda i: (0, 0)),
            pl.BlockSpec((H2, 128), lambda i: (0, 0)),
            pl.BlockSpec((1, 128), lambda i: (0, 0)),
        ],
        out_specs=pl.BlockSpec((Bp, 128), lambda i: (0, 0)),
        compiler_params=pltpu.CompilerParams(dimension_semantics=("arbitrary",)),
        cost_estimate=pl.CostEstimate(flops=flops, transcendentals=0,
                                      bytes_accessed=bytes_accessed),
    )(x_src, keep_rows, w1_k, b1, w2_k, b2, cw1_k, cb1, cw2_k, cb2_k)
    return out[:, 0]


# ---------------------------------------------------------------------------
# FwdObject re-implementation (synthetic, deterministic parameters)
# ---------------------------------------------------------------------------
class FwdObjectPallas:
    def __init__(self, key, n_hist_frames=3, obj_dim=14,
                 hidden_dyn=32, hidden_cls=32, strip_padding=True):
        self.n_hist_frames = n_hist_frames
        self.strip_padding = strip_padding
        self.cls_pixel = False  # object-space classifier branch

        ks = jax.random.split(key, 8)
        D, H1, H2 = obj_dim, hidden_dyn, hidden_cls
        IN = n_hist_frames * D
        self.dyn_params = (
            jax.random.normal(ks[0], (IN, H1), jnp.float32) / math.sqrt(IN),
            0.01 * jax.random.normal(ks[1], (1, H1), jnp.float32),
            jax.random.normal(ks[2], (H1, D), jnp.float32) / math.sqrt(H1),
            0.01 * jax.random.normal(ks[3], (1, D), jnp.float32),
        )
        self.cls_params = (
            jax.random.normal(ks[4], (D, H2), jnp.float32) / math.sqrt(D),
            0.01 * jax.random.normal(ks[5], (1, H2), jnp.float32),
            jax.random.normal(ks[6], (H2, 1), jnp.float32) / math.sqrt(H2),
            0.01 * jax.random.normal(ks[7], (1, 1), jnp.float32),
        )

    def forward(self, obj_tensor, tensor_is_solved, n_hist_frames=3, n_fwd_times=1,
                nslices=-1, need_intermediate=False):
        tensor = jnp.asarray(obj_tensor, jnp.float32)
        predictions = _forward_impl(
            tensor, self.dyn_params, self.cls_params,
            n_hist=n_hist_frames, n_fwd=n_fwd_times,
            nslices=nslices, strip_padding=self.strip_padding)
        # TODO(synk): render_frames / pixel rollout needs the phyre rasterizer; no Pallas equivalent.
        # TODO(synk): compute_losses (BCE-with-logits, masked MSE) and train_noise_frac noise
        #             injection are training-only and not ported; intermediate rollout frames are
        #             not materialized to HBM on this inference fast path (need_intermediate n/a).
        all_preds = {'feats': None, 'is_solved': predictions, 'pixels': None}
        return all_preds, {}


# ---------------------------------------------------------------------------
# Pure-JAX f32 reference (same masked-strip semantics) for correctness check
# ---------------------------------------------------------------------------
def _ref_forward(tensor, dyn_params, cls_params, n_hist, n_fwd, strip_padding=True):
    B, T, Nobj, D = tensor.shape
    n_slices = T - n_hist + 1
    Bp = n_slices * B
    if strip_padding:
        keep = (jnp.sum(tensor, axis=(0, 1, 3)) != 0).astype(jnp.float32)
    else:
        keep = jnp.ones((Nobj,), jnp.float32)
    n_kept = jnp.maximum(jnp.sum(keep), 1.0)
    windows = jnp.stack([tensor[:, i:i + n_hist] for i in range(n_slices)], axis=1)
    prev = jnp.transpose(windows, (1, 0, 2, 3, 4)).reshape(Bp, n_hist, Nobj, D)
    w1, b1, w2, b2 = dyn_params
    hist = [prev[:, j] for j in range(n_hist)]
    roll = list(hist)
    for _ in range(n_fwd):
        x = jnp.concatenate(hist, axis=-1).reshape(Bp * Nobj, n_hist * D)
        h = jnp.maximum(x @ w1 + b1, 0.0)
        delta = h @ w2 + b2
        pred = (hist[-1].reshape(Bp * Nobj, D) + delta).reshape(Bp, Nobj, D)
        hist = hist[1:] + [pred]
        roll.append(pred)
    T_total = n_hist + n_fwd
    stacked = jnp.stack(roll, axis=1)                             # (Bp, T_total, Nobj, D)
    pooled = (stacked * keep[None, None, :, None]).sum(axis=(1, 2)) / (T_total * n_kept)
    cw1, cb1, cw2, cb2 = cls_params
    hc = jnp.maximum(pooled @ cw1 + cb1, 0.0)
    return (hc @ cw2 + cb2)[:, 0]


# ---------------------------------------------------------------------------
if __name__ == "__main__":
    key = jax.random.PRNGKey(0)
    k_in, k_par = jax.random.split(key)

    B, T, Nobj, D = 2, 8, 6, 14          # small PHYRE-like object tensor
    n_hist, n_fwd = 3, 2

    obj_tensor = jax.random.uniform(k_in, (B, T, Nobj, D), jnp.float32)
    obj_tensor = obj_tensor.at[:, :, -1, :].set(0.0)   # one padded object slot
    tensor_is_solved = jnp.array([1.0, 0.0], jnp.float32)

    model = FwdObjectPallas(k_par, n_hist_frames=n_hist, obj_dim=D,
                            hidden_dyn=32, hidden_cls=32, strip_padding=True)

    all_preds, losses = model.forward(obj_tensor, tensor_is_solved,
                                      n_hist_frames=n_hist, n_fwd_times=n_fwd,
                                      nslices=-1, need_intermediate=False)
    preds = jax.block_until_ready(all_preds['is_solved'])

    assert preds.shape == (B * (T - n_hist + 1),)
    assert bool(jnp.all(jnp.isfinite(preds)))

    # Correctness vs pure-JAX f32 reference (loose tol: bf16 MXU operands in kernel).
    ref = _ref_forward(obj_tensor, model.dyn_params, model.cls_params,
                       n_hist, n_fwd, strip_padding=True)
    max_err = float(jnp.max(jnp.abs(preds - ref)))
    assert max_err < 0.1, f"mismatch vs reference: max abs err {max_err}"

    print("KERNEL_OK")
</pallas_src>

<mosaic_0001>
module attributes {stable_mosaic.version = 11 : i64} {
  func.func @_fused_rollout_cls_kernel(%arg0: i32, %arg1: memref<6x16x14xf32, #tpu.memory_space<vmem>>, %arg2: memref<72x1xf32, #tpu.memory_space<vmem>>, %arg3: memref<42x32xbf16, #tpu.memory_space<vmem>>, %arg4: memref<1x32xf32, #tpu.memory_space<vmem>>, %arg5: memref<32x14xbf16, #tpu.memory_space<vmem>>, %arg6: memref<1x14xf32, #tpu.memory_space<vmem>>, %arg7: memref<14x32xbf16, #tpu.memory_space<vmem>>, %arg8: memref<1x32xf32, #tpu.memory_space<vmem>>, %arg9: memref<32x128xbf16, #tpu.memory_space<vmem>>, %arg10: memref<1x128xf32, #tpu.memory_space<vmem>>, %arg11: memref<12x128xf32, #tpu.memory_space<vmem>>) attributes {dimension_semantics = [#tpu.dimension_semantics<arbitrary>], iteration_bounds = array<i64: 1>, scalar_prefetch = 0 : i64, scratch_operands = 0 : i64, tpu.core_type = #tpu.core_type<tc>, window_params = [{pipeline_mode = #tpu.pipeline_mode<synchronous>, transform_indices = @transform_0, window_bounds = array<i64: 6, 16, 14>}, {pipeline_mode = #tpu.pipeline_mode<synchronous>, transform_indices = @transform_1, window_bounds = array<i64: 72, 1>}, {pipeline_mode = #tpu.pipeline_mode<synchronous>, transform_indices = @transform_2, window_bounds = array<i64: 42, 32>}, {pipeline_mode = #tpu.pipeline_mode<synchronous>, transform_indices = @transform_3, window_bounds = array<i64: 1, 32>}, {pipeline_mode = #tpu.pipeline_mode<synchronous>, transform_indices = @transform_4, window_bounds = array<i64: 32, 14>}, {pipeline_mode = #tpu.pipeline_mode<synchronous>, transform_indices = @transform_5, window_bounds = array<i64: 1, 14>}, {pipeline_mode = #tpu.pipeline_mode<synchronous>, transform_indices = @transform_6, window_bounds = array<i64: 14, 32>}, {pipeline_mode = #tpu.pipeline_mode<synchronous>, transform_indices = @transform_7, window_bounds = array<i64: 1, 32>}, {pipeline_mode = #tpu.pipeline_mode<synchronous>, transform_indices = @transform_8, window_bounds = array<i64: 32, 128>}, {pipeline_mode = #tpu.pipeline_mode<synchronous>, transform_indices = @transform_9, window_bounds = array<i64: 1, 128>}, {pipeline_mode = #tpu.pipeline_mode<synchronous>, transform_indices = @transform_10, window_bounds = array<i64: 12, 128>}]} {
    %c0 = arith.constant 0 : index
    %c0_0 = arith.constant 0 : index
    %c0_1 = arith.constant 0 : index
    %0 = vector.load %arg1[%c0, %c0_0, %c0_1] : memref<6x16x14xf32, #tpu.memory_space<vmem>>, vector<1x12x14xf32>
    %1 = vector.shape_cast %0 : vector<1x12x14xf32> to vector<12x14xf32>
    %c1 = arith.constant 1 : index
    %c0_2 = arith.constant 0 : index
    %c0_3 = arith.constant 0 : index
    %2 = vector.load %arg1[%c1, %c0_2, %c0_3] : memref<6x16x14xf32, #tpu.memory_space<vmem>>, vector<1x12x14xf32>
    %3 = vector.shape_cast %2 : vector<1x12x14xf32> to vector<12x14xf32>
    %c2 = arith.constant 2 : index
    %c0_4 = arith.constant 0 : index
    %c0_5 = arith.constant 0 : index
    %4 = vector.load %arg1[%c2, %c0_4, %c0_5] : memref<6x16x14xf32, #tpu.memory_space<vmem>>, vector<1x12x14xf32>
    %5 = vector.shape_cast %4 : vector<1x12x14xf32> to vector<12x14xf32>
    %c3 = arith.constant 3 : index
    %c0_6 = arith.constant 0 : index
    %c0_7 = arith.constant 0 : index
    %6 = vector.load %arg1[%c3, %c0_6, %c0_7] : memref<6x16x14xf32, #tpu.memory_space<vmem>>, vector<1x12x14xf32>
    %7 = vector.shape_cast %6 : vector<1x12x14xf32> to vector<12x14xf32>
    %c4 = arith.constant 4 : index
    %c0_8 = arith.constant 0 : index
    %c0_9 = arith.constant 0 : index
    %8 = vector.load %arg1[%c4, %c0_8, %c0_9] : memref<6x16x14xf32, #tpu.memory_space<vmem>>, vector<1x12x14xf32>
    %9 = vector.shape_cast %8 : vector<1x12x14xf32> to vector<12x14xf32>
    %c5 = arith.constant 5 : index
    %c0_10 = arith.constant 0 : index
    %c0_11 = arith.constant 0 : index
    %10 = vector.load %arg1[%c5, %c0_10, %c0_11] : memref<6x16x14xf32, #tpu.memory_space<vmem>>, vector<1x12x14xf32>
    %11 = vector.shape_cast %10 : vector<1x12x14xf32> to vector<12x14xf32>
    %12 = tpu.concatenate %1, %3, %5, %7, %9, %11 in 0 : vector<12x14xf32>, vector<12x14xf32>, vector<12x14xf32>, vector<12x14xf32>, vector<12x14xf32>, vector<12x14xf32> -> vector<72x14xf32>
    %c0_12 = arith.constant 0 : index
    %c2_13 = arith.constant 2 : index
    %c0_14 = arith.constant 0 : index
    %13 = vector.load %arg1[%c0_12, %c2_13, %c0_14] : memref<6x16x14xf32, #tpu.memory_space<vmem>>, vector<1x12x14xf32>
    %14 = vector.shape_cast %13 : vector<1x12x14xf32> to vector<12x14xf32>
    %c1_15 = arith.constant 1 : index
    %c2_16 = arith.constant 2 : index
    %c0_17 = arith.constant 0 : index
    %15 = vector.load %arg1[%c1_15, %c2_16, %c0_17] : memref<6x16x14xf32, #tpu.memory_space<vmem>>, vector<1x12x14xf32>
    %16 = vector.shape_cast %15 : vector<1x12x14xf32> to vector<12x14xf32>
    %c2_18 = arith.constant 2 : index
    %c2_19 = arith.constant 2 : index
    %c0_20 = arith.constant 0 : index
    %17 = vector.load %arg1[%c2_18, %c2_19, %c0_20] : memref<6x16x14xf32, #tpu.memory_space<vmem>>, vector<1x12x14xf32>
    %18 = vector.shape_cast %17 : vector<1x12x14xf32> to vector<12x14xf32>
    %c3_21 = arith.constant 3 : index
    %c2_22 = arith.constant 2 : index
    %c0_23 = arith.constant 0 : index
    %19 = vector.load %arg1[%c3_21, %c2_22, %c0_23] : memref<6x16x14xf32, #tpu.memory_space<vmem>>, vector<1x12x14xf32>
    %20 = vector.shape_cast %19 : vector<1x12x14xf32> to vector<12x14xf32>
    %c4_24 = arith.constant 4 : index
    %c2_25 = arith.constant 2 : index
    %c0_26 = arith.constant 0 : index
    %21 = vector.load %arg1[%c4_24, %c2_25, %c0_26] : memref<6x16x14xf32, #tpu.memory_space<vmem>>, vector<1x12x14xf32>
    %22 = vector.shape_cast %21 : vector<1x12x14xf32> to vector<12x14xf32>
    %c5_27 = arith.constant 5 : index
    %c2_28 = arith.constant 2 : index
    %c0_29 = arith.constant 0 : index
    %23 = vector.load %arg1[%c5_27, %c2_28, %c0_29] : memref<6x16x14xf32, #tpu.memory_space<vmem>>, vector<1x12x14xf32>
    %24 = vector.shape_cast %23 : vector<1x12x14xf32> to vector<12x14xf32>
    %25 = tpu.concatenate %14, %16, %18, %20, %22, %24 in 0 : vector<12x14xf32>, vector<12x14xf32>, vector<12x14xf32>, vector<12x14xf32>, vector<12x14xf32>, vector<12x14xf32> -> vector<72x14xf32>
    %c0_30 = arith.constant 0 : index
    %c4_31 = arith.constant 4 : index
    %c0_32 = arith.constant 0 : index
    %26 = vector.load %arg1[%c0_30, %c4_31, %c0_32] : memref<6x16x14xf32, #tpu.memory_space<vmem>>, vector<1x12x14xf32>
    %27 = vector.shape_cast %26 : vector<1x12x14xf32> to vector<12x14xf32>
    %c1_33 = arith.constant 1 : index
    %c4_34 = arith.constant 4 : index
    %c0_35 = arith.constant 0 : index
    %28 = vector.load %arg1[%c1_33, %c4_34, %c0_35] : memref<6x16x14xf32, #tpu.memory_space<vmem>>, vector<1x12x14xf32>
    %29 = vector.shape_cast %28 : vector<1x12x14xf32> to vector<12x14xf32>
    %c2_36 = arith.constant 2 : index
    %c4_37 = arith.constant 4 : index
    %c0_38 = arith.constant 0 : index
    %30 = vector.load %arg1[%c2_36, %c4_37, %c0_38] : memref<6x16x14xf32, #tpu.memory_space<vmem>>, vector<1x12x14xf32>
    %31 = vector.shape_cast %30 : vector<1x12x14xf32> to vector<12x14xf32>
    %c3_39 = arith.constant 3 : index
    %c4_40 = arith.constant 4 : index
    %c0_41 = arith.constant 0 : index
    %32 = vector.load %arg1[%c3_39, %c4_40, %c0_41] : memref<6x16x14xf32, #tpu.memory_space<vmem>>, vector<1x12x14xf32>
    %33 = vector.shape_cast %32 : vector<1x12x14xf32> to vector<12x14xf32>
    %c4_42 = arith.constant 4 : index
    %c4_43 = arith.constant 4 : index
    %c0_44 = arith.constant 0 : index
    %34 = vector.load %arg1[%c4_42, %c4_43, %c0_44] : memref<6x16x14xf32, #tpu.memory_space<vmem>>, vector<1x12x14xf32>
    %35 = vector.shape_cast %34 : vector<1x12x14xf32> to vector<12x14xf32>
    %c5_45 = arith.constant 5 : index
    %c4_46 = arith.constant 4 : index
    %c0_47 = arith.constant 0 : index
    %36 = vector.load %arg1[%c5_45, %c4_46, %c0_47] : memref<6x16x14xf32, #tpu.memory_space<vmem>>, vector<1x12x14xf32>
    %37 = vector.shape_cast %36 : vector<1x12x14xf32> to vector<12x14xf32>
    %38 = tpu.concatenate %27, %29, %31, %33, %35, %37 in 0 : vector<12x14xf32>, vector<12x14xf32>, vector<12x14xf32>, vector<12x14xf32>, vector<12x14xf32>, vector<12x14xf32> -> vector<72x14xf32>
    %39 = arith.truncf %12 : vector<72x14xf32> to vector<72x14xbf16>
    %40 = arith.truncf %25 : vector<72x14xf32> to vector<72x14xbf16>
    %41 = arith.truncf %38 : vector<72x14xf32> to vector<72x14xbf16>
    %42 = arith.addf %12, %25 : vector<72x14xf32>
    %43 = arith.addf %42, %38 : vector<72x14xf32>
    %c0_48 = arith.constant 0 : index
    %c0_49 = arith.constant 0 : index
    %44 = vector.load %arg3[%c0_48, %c0_49] : memref<42x32xbf16, #tpu.memory_space<vmem>>, vector<42x32xbf16>
    %c0_50 = arith.constant 0 : index
    %c0_51 = arith.constant 0 : index
    %45 = vector.load %arg5[%c0_50, %c0_51] : memref<32x14xbf16, #tpu.memory_space<vmem>>, vector<32x14xbf16>
    %c0_52 = arith.constant 0 : index
    %c0_53 = arith.constant 0 : index
    %46 = vector.load %arg4[%c0_52, %c0_53] : memref<1x32xf32, #tpu.memory_space<vmem>>, vector<1x32xf32>
    %47 = vector.shape_cast %46 : vector<1x32xf32> to vector<1x32xf32>
    %48 = vector.broadcast %47 : vector<1x32xf32> to vector<72x32xf32>
    %c0_54 = arith.constant 0 : index
    %c0_55 = arith.constant 0 : index
    %49 = vector.load %arg6[%c0_54, %c0_55] : memref<1x14xf32, #tpu.memory_space<vmem>>, vector<1x14xf32>
    %50 = vector.shape_cast %49 : vector<1x14xf32> to vector<1x14xf32>
    %51 = vector.broadcast %50 : vector<1x14xf32> to vector<72x14xf32>
    %52 = tpu.concatenate %39, %40, %41 in 1 : vector<72x14xbf16>, vector<72x14xbf16>, vector<72x14xbf16> -> vector<72x42xbf16>
    %cst = arith.constant dense<0.000000e+00> : vector<72x32xf32>
    %53 = tpu.matmul %52, %44, %cst {dimension_numbers = #tpu.dot_dimension_numbers<[1], [0], [0], [1], [0, 0, 1, 1], [], []>} : vector<72x42xbf16>, vector<42x32xbf16>, vector<72x32xf32> -> vector<72x32xf32>
    %54 = arith.addf %53, %48 : vector<72x32xf32>
    %cst_56 = arith.constant 0.000000e+00 : f32
    %55 = vector.broadcast %cst_56 : f32 to vector<72x32xf32>
    %56 = arith.maximumf %54, %55 : vector<72x32xf32>
    %57 = arith.truncf %56 : vector<72x32xf32> to vector<72x32xbf16>
    %cst_57 = arith.constant dense<0.000000e+00> : vector<72x14xf32>
    %58 = tpu.matmul %57, %45, %cst_57 {dimension_numbers = #tpu.dot_dimension_numbers<[1], [0], [0], [1], [0, 0, 1, 1], [], []>} : vector<72x32xbf16>, vector<32x14xbf16>, vector<72x14xf32> -> vector<72x14xf32>
    %59 = arith.addf %58, %51 : vector<72x14xf32>
    %60 = arith.addf %38, %59 : vector<72x14xf32>
    %61 = arith.addf %43, %60 : vector<72x14xf32>
    %62 = arith.truncf %60 : vector<72x14xf32> to vector<72x14xbf16>
    %63 = tpu.concatenate %40, %41, %62 in 1 : vector<72x14xbf16>, vector<72x14xbf16>, vector<72x14xbf16> -> vector<72x42xbf16>
    %cst_58 = arith.constant dense<0.000000e+00> : vector<72x32xf32>
    %64 = tpu.matmul %63, %44, %cst_58 {dimension_numbers = #tpu.dot_dimension_numbers<[1], [0], [0], [1], [0, 0, 1, 1], [], []>} : vector<72x42xbf16>, vector<42x32xbf16>, vector<72x32xf32> -> vector<72x32xf32>
    %65 = arith.addf %64, %48 : vector<72x32xf32>
    %cst_59 = arith.constant 0.000000e+00 : f32
    %66 = vector.broadcast %cst_59 : f32 to vector<72x32xf32>
    %67 = arith.maximumf %65, %66 : vector<72x32xf32>
    %68 = arith.truncf %67 : vector<72x32xf32> to vector<72x32xbf16>
    %cst_60 = arith.constant dense<0.000000e+00> : vector<72x14xf32>
    %69 = tpu.matmul %68, %45, %cst_60 {dimension_numbers = #tpu.dot_dimension_numbers<[1], [0], [0], [1], [0, 0, 1, 1], [], []>} : vector<72x32xbf16>, vector<32x14xbf16>, vector<72x14xf32> -> vector<72x14xf32>
    %70 = arith.addf %69, %51 : vector<72x14xf32>
    %71 = arith.addf %60, %70 : vector<72x14xf32>
    %72 = arith.addf %61, %71 : vector<72x14xf32>
    %c0_61 = arith.constant 0 : index
    %c0_62 = arith.constant 0 : index
    %73 = vector.load %arg2[%c0_61, %c0_62] : memref<72x1xf32, #tpu.memory_space<vmem>>, vector<72x1xf32>
    %74 = vector.broadcast %73 : vector<72x1xf32> to vector<72x14xf32>
    %75 = arith.mulf %72, %74 : vector<72x14xf32>
    %76 = vector.extract_strided_slice %75 {offsets = [0, 0], sizes = [12, 14], strides = [1, 1]} : vector<72x14xf32> to vector<12x14xf32>
    %77 = vector.extract_strided_slice %75 {offsets = [12, 0], sizes = [12, 14], strides = [1, 1]} : vector<72x14xf32> to vector<12x14xf32>
    %78 = arith.addf %76, %77 : vector<12x14xf32>
    %79 = vector.extract_strided_slice %75 {offsets = [24, 0], sizes = [12, 14], strides = [1, 1]} : vector<72x14xf32> to vector<12x14xf32>
    %80 = arith.addf %78, %79 : vector<12x14xf32>
    %81 = vector.extract_strided_slice %75 {offsets = [36, 0], sizes = [12, 14], strides = [1, 1]} : vector<72x14xf32> to vector<12x14xf32>
    %82 = arith.addf %80, %81 : vector<12x14xf32>
    %83 = vector.extract_strided_slice %75 {offsets = [48, 0], sizes = [12, 14], strides = [1, 1]} : vector<72x14xf32> to vector<12x14xf32>
    %84 = arith.addf %82, %83 : vector<12x14xf32>
    %85 = vector.extract_strided_slice %75 {offsets = [60, 0], sizes = [12, 14], strides = [1, 1]} : vector<72x14xf32> to vector<12x14xf32>
    %86 = arith.addf %84, %85 : vector<12x14xf32>
    %87 = arith.truncf %86 : vector<12x14xf32> to vector<12x14xbf16>
    %c0_63 = arith.constant 0 : index
    %c0_64 = arith.constant 0 : index
    %88 = vector.load %arg7[%c0_63, %c0_64] : memref<14x32xbf16, #tpu.memory_space<vmem>>, vector<14x32xbf16>
    %cst_65 = arith.constant dense<0.000000e+00> : vector<12x32xf32>
    %89 = tpu.matmul %87, %88, %cst_65 {dimension_numbers = #tpu.dot_dimension_numbers<[1], [0], [0], [1], [0, 0, 1, 1], [], []>} : vector<12x14xbf16>, vector<14x32xbf16>, vector<12x32xf32> -> vector<12x32xf32>
    %c0_66 = arith.constant 0 : index
    %c0_67 = arith.constant 0 : index
    %90 = vector.load %arg8[%c0_66, %c0_67] : memref<1x32xf32, #tpu.memory_space<vmem>>, vector<1x32xf32>
    %91 = vector.broadcast %90 : vector<1x32xf32> to vector<12x32xf32>
    %92 = arith.addf %89, %91 : vector<12x32xf32>
    %cst_68 = arith.constant 0.000000e+00 : f32
    %93 = vector.broadcast %cst_68 : f32 to vector<12x32xf32>
    %94 = arith.maximumf %92, %93 : vector<12x32xf32>
    %95 = arith.truncf %94 : vector<12x32xf32> to vector<12x32xbf16>
    %c0_69 = arith.constant 0 : index
    %c0_70 = arith.constant 0 : index
    %96 = vector.load %arg9[%c0_69, %c0_70] : memref<32x128xbf16, #tpu.memory_space<vmem>>, vector<32x128xbf16>
    %cst_71 = arith.constant dense<0.000000e+00> : vector<12x128xf32>
    %97 = tpu.matmul %95, %96, %cst_71 {dimension_numbers = #tpu.dot_dimension_numbers<[1], [0], [0], [1], [0, 0, 1, 1], [], []>} : vector<12x32xbf16>, vector<32x128xbf16>, vector<12x128xf32> -> vector<12x128xf32>
    %c0_72 = arith.constant 0 : index
    %c0_73 = arith.constant 0 : index
    %98 = vector.load %arg10[%c0_72, %c0_73] : memref<1x128xf32, #tpu.memory_space<vmem>>, vector<1x128xf32>
    %99 = vector.broadcast %98 : vector<1x128xf32> to vector<12x128xf32>
    %100 = arith.addf %97, %99 : vector<12x128xf32>
    %c0_74 = arith.constant 0 : index
    %c0_75 = arith.constant 0 : index
    %101 = vector.load %arg11[%c0_74, %c0_75] : memref<12x128xf32, #tpu.memory_space<vmem>>, vector<12x128xf32>
    tpu.vector_store %arg11[%c0_74, %c0_75], %100 {strides = array<i32>} : memref<12x128xf32, #tpu.memory_space<vmem>>, vector<12x128xf32>,
    return
  }
  func.func @transform_0(%arg0: i32) -> (i32, i32, i32) {
    %c0_i32 = arith.constant 0 : i32
    %c0_i32_0 = arith.constant 0 : i32
    %c0_i32_1 = arith.constant 0 : i32
    %c0_i32_2 = arith.constant 0 : i32
    return %c0_i32, %c0_i32_0, %c0_i32_1 : i32, i32, i32
  }
  func.func @transform_1(%arg0: i32) -> (i32, i32) {
    %c0_i32 = arith.constant 0 : i32
    %c0_i32_0 = arith.constant 0 : i32
    %c0_i32_1 = arith.constant 0 : i32
    return %c0_i32, %c0_i32_0 : i32, i32
  }
  func.func @transform_2(%arg0: i32) -> (i32, i32) {
    %c0_i32 = arith.constant 0 : i32
    %c0_i32_0 = arith.constant 0 : i32
    %c0_i32_1 = arith.constant 0 : i32
    return %c0_i32, %c0_i32_0 : i32, i32
  }
  func.func @transform_3(%arg0: i32) -> (i32, i32) {
    %c0_i32 = arith.constant 0 : i32
    %c0_i32_0 = arith.constant 0 : i32
    %c0_i32_1 = arith.constant 0 : i32
    return %c0_i32, %c0_i32_0 : i32, i32
  }
  func.func @transform_4(%arg0: i32) -> (i32, i32) {
    %c0_i32 = arith.constant 0 : i32
    %c0_i32_0 = arith.constant 0 : i32
    %c0_i32_1 = arith.constant 0 : i32
    return %c0_i32, %c0_i32_0 : i32, i32
  }
  func.func @transform_5(%arg0: i32) -> (i32, i32) {
    %c0_i32 = arith.constant 0 : i32
    %c0_i32_0 = arith.constant 0 : i32
    %c0_i32_1 = arith.constant 0 : i32
    return %c0_i32, %c0_i32_0 : i32, i32
  }
  func.func @transform_6(%arg0: i32) -> (i32, i32) {
    %c0_i32 = arith.constant 0 : i32
    %c0_i32_0 = arith.constant 0 : i32
    %c0_i32_1 = arith.constant 0 : i32
    return %c0_i32, %c0_i32_0 : i32, i32
  }
  func.func @transform_7(%arg0: i32) -> (i32, i32) {
    %c0_i32 = arith.constant 0 : i32
    %c0_i32_0 = arith.constant 0 : i32
    %c0_i32_1 = arith.constant 0 : i32
    return %c0_i32, %c0_i32_0 : i32, i32
  }
  func.func @transform_8(%arg0: i32) -> (i32, i32) {
    %c0_i32 = arith.constant 0 : i32
    %c0_i32_0 = arith.constant 0 : i32
    %c0_i32_1 = arith.constant 0 : i32
    return %c0_i32, %c0_i32_0 : i32, i32
  }
  func.func @transform_9(%arg0: i32) -> (i32, i32) {
    %c0_i32 = arith.constant 0 : i32
    %c0_i32_0 = arith.constant 0 : i32
    %c0_i32_1 = arith.constant 0 : i32
    return %c0_i32, %c0_i32_0 : i32, i32
  }
  func.func @transform_10(%arg0: i32) -> (i32, i32) {
    %c0_i32 = arith.constant 0 : i32
    %c0_i32_0 = arith.constant 0 : i32
    %c0_i32_1 = arith.constant 0 : i32
    return %c0_i32, %c0_i32_0 : i32, i32
  }
}

</mosaic_0001>

<bundles_post_ra>
// kernel: _forward_impl.1
= control target key start
LH: loop header
LB: loop body
LE: loop exit
PB: predicated region body
PF: predicated region fallthrough
CT: control target
= control target key end

     0   :  { %vm55_vm0 = vcmask 1043456   ;;  %s962_s13 = smov 14   ;;  %s963_s19 = smov 28   ;;  %vm357_vm1 = vcmask 1044480   ;;  %vm302_vm2 = vcmask 113664   ;;  %vm318_vm3 = vcmask 228352   ;;  %s1547_s0 = inlined_call_operand.vmem [shape: f32[6,16,14], index: 0, kind: input, shape index: {}]   ;;  %s1548_s2 = inlined_call_operand.vmem [shape: bf16[42,32], index: 2, kind: input, shape index: {}]   ;;  %s1549_s3 = inlined_call_operand.vmem [shape: f32[1,32], index: 3, kind: input, shape index: {}]   ;;  %s1550_s5 = inlined_call_operand.vmem [shape: f32[1,14], index: 5, kind: input, shape index: {}]   ;;  %s1551_s4 = inlined_call_operand.vmem [shape: bf16[32,14], index: 4, kind: input, shape index: {}]   ;;  %s1552_s1 = inlined_call_operand.vmem [shape: f32[72,1], index: 1, kind: input, shape index: {}]   ;;  %s1553_s7 = inlined_call_operand.vmem [shape: f32[1,32], index: 7, kind: input, shape index: {}]   ;;  %s1554_s6 = inlined_call_operand.vmem [shape: bf16[14,32], index: 6, kind: input, shape index: {}]   ;;  %s1555_s8 = inlined_call_operand.vmem [shape: bf16[32,128], index: 8, kind: input, shape index: {}]   ;;  %s1556_s9 = inlined_call_operand.vmem [shape: f32[1,128], index: 9, kind: input, shape index: {}]   ;;  %s1557_s10 = inlined_call_operand.vmem [shape: f32[12,128], index: 10, kind: output, shape index: {}]  }
   0x1   :  { %v78_v0 = vld [vmem:[%s1547_s0 + $0x2] sm:$0xff]  ;;  %v79_v1 = vld [vmem:[%s1547_s0 + $0xa] sm:$0xf]  ;;  %v870_v2 = vld [vmem:[%s1547_s0 + $0x12] sm:$0xff]  ;;  %vm346_vm4 = vcmask 343040   ;;  %vm420_vm5 = vcmask 261120  }
   0x2   :  { %v92_v3 = vrot.slane %v870_v2, 4  ;;  %v159_v4 = vpack.c.bf16 %v78_v0, %v78_v0  ;;  %v1032_v5 = vld [vmem:[%s1547_s0] sm:$0xff]  ;;  %v37_v6 = vld [vmem:[%s1547_s0 + $0x8] sm:$0xf]  ;;  %v860_v7 = vld [vmem:[%s1547_s0 + $0x10] sm:$0xff]  ;;  %vm796_vm6 = vcmask 1046528  }
   0x3   :  { %v56_v8 = vrot.slane %v860_v7, 4  ;;  %v1041_v9 = vadd.f32 %v78_v0, %v1032_v5  ;;  %v115_v10 = vld [vmem:[%s1547_s0 + $0xc] sm:$0xf]  ;;  %v880_v11 = vld [vmem:[%s1547_s0 + $0x14] sm:$0xff]  ;;  %v1053_v14 = vld [vmem:[%s1547_s0 + $0x4] sm:$0xff] }
   0x4   :  { %v111_v12 = vsel %vm55_vm0, %v79_v1, %v92_v3  ;;  %v245_v13 = vunpack.c.l.b16 %v159_v4  ;;  %v128_v15 = vrot.slane %v880_v11, 4  ;;  %v871_v16 = vld [vmem:[%s1547_s0 + $0x1a] sm:$0xf]  ;;  %v872_v17 = vld [vmem:[%s1547_s0 + $0x22] sm:$0xff]  ;;  %v168_v28 = vpack.c.bf16 %v1053_v14, %v1053_v14  ;;  %v874_v32 = vld [vmem:[%s1547_s0 + $0x32] sm:$0xff] }
   0x5   :  { %v160_v18 = vpack.c.bf16 %v111_v12, %v111_v12  ;;  %v1062_v19 = vsel %vm55_vm0, %v37_v6, %v56_v8  ;;  %v93_v20 = vrot.slane %v871_v16, 4  ;;  %v162_v21 = vpack.c.bf16 %v872_v17, %v872_v17  ;;  %v861_v22 = vld [vmem:[%s1547_s0 + $0x18] sm:$0xf]  ;;  %v881_v25 = vld [vmem:[%s1547_s0 + $0x1c] sm:$0xf]  ;;  %v1079_v26 = vld [vmem:[%s1547_s0 + $0x24] sm:$0xff] }
   0x6   :  { %v1068_v23 = vadd.f32 %v111_v12, %v1062_v19  ;;  %v1071_v24 = vsel %vm55_vm0, %v115_v10, %v128_v15  ;;  %v1089_v31 = vld [vmem:[%s1547_s0 + $0x20] sm:$0xff]  ;;  %v875_v33 = vld [vmem:[%s1547_s0 + $0x3a] sm:$0xf]  ;;  %v57_v36 = vrot.slane %v861_v22, 4  ;;  %v129_v39 = vrot.slane %v881_v25, 4  ;;  %v864_v47 = vld [vmem:[%s1547_s0 + $0x30] sm:$0xff] }
   0x7   :  { %v246_v27 = vunpack.c.l.b16 %v160_v18  ;;  %v169_v29 = vpack.c.bf16 %v1071_v24, %v1071_v24  ;;  %v94_v30 = vsel %vm55_vm0, %v92_v3, %v93_v20  ;;  %v248_v35 = vunpack.c.l.b16 %v162_v21  ;;  %v873_v43 = vld [vmem:[%s1547_s0 + $0x2a] sm:$0xf]  ;;  %v1113_v46 = vld [vmem:[%s1547_s0 + $0x34] sm:$0xff]  ;;  %v1140_v58 = vld [vmem:[%s1547_s0 + $0x42] sm:$0xff] }
   0x8   :  { %v161_v34 = vpack.c.bf16 %v94_v30, %v94_v30  ;;  %v1098_v37 = vadd.f32 %v872_v17, %v1089_v31  ;;  %v171_v40 = vpack.c.bf16 %v1079_v26, %v1079_v26  ;;  %v1105_v42 = vsel %vm55_vm0, %v56_v8, %v57_v36  ;;  %v865_v52 = vld [vmem:[%s1547_s0 + $0x38] sm:$0xf]  ;;  %v863_v62 = vld [vmem:[%s1547_s0 + $0x28] sm:$0xf]  ;;  %v883_v1 = vld [vmem:[%s1547_s0 + $0x2c] sm:$0xf] }
   0x9   :  { %v1100_v38 = vpack.c.b16 %v246_v27, %v245_v13  ;;  %v99_v44 = vrot.slane %v874_v32, 4  ;;  %v100_v45 = vrot.slane %v875_v33, 4  ;;  %v278_v48 = vunpack.c.l.b16 %v168_v28  ;;  %v878_v53 = vld [vmem:[%s1547_s0 + $0x52] sm:$0xff]  ;;  %v877_v4 = vld [vmem:[%s1547_s0 + $0x4a] sm:$0xf] }
   0xa   :  { %v247_v41 = vunpack.c.l.b16 %v161_v34  ;;  %v279_v49 = vunpack.c.l.b16 %v169_v29  ;;  %v1121_v50 = vadd.f32 %v94_v30, %v1105_v42  ;;  %v1124_v51 = vsel %vm55_vm0, %v128_v15, %v129_v39  ;;  %v1166_v15 = vld [vmem:[%s1547_s0 + $0x44] sm:$0xff]  ;;  %v888_v16 = vld [vmem:[%s1547_s0 + $0x54] sm:$0xff]  ;;  %v885_v17 = vld [vmem:[%s1547_s0 + $0x3c] sm:$0xf] }
   0xb   :  { %259 = vrot.lane.b32.xlu0 %v1100_v38, %s962_s13  ;;  %v170_v55 = vpack.c.bf16 %v1124_v51, %v1124_v51  ;;  %v281_v56 = vunpack.c.l.b16 %v171_v40  ;;  %v101_v57 = vsel %vm55_vm0, %v99_v44, %v100_v45  ;;  %v112_v59 = vsel %vm55_vm0, %v873_v43, %v99_v44  ;;  %v889_v25 = vld [vmem:[%s1547_s0 + $0x5c] sm:$0xf]  ;;  %v887_v32 = vld [vmem:[%s1547_s0 + $0x4c] sm:$0xf]  ;;  %v900_v44 = vld [vmem:[%s1548_s2 + $0x10] sm:$0xf] }
   0xc   :  { %v1132_v54 = vpack.c.b16 %v248_v35, %v247_v41  ;;  %v135_v60 = vrot.slane %v1113_v46, 4  ;;  %v164_v61 = vpack.c.bf16 %v101_v57, %v101_v57  ;;  %v63_v63 = vrot.slane %v864_v47, 4  ;;  %v879_v27 = vld [vmem:[%s1547_s0 + $0x5a] sm:$0xf]  ;;  %v946_v45 = vld [vmem:[%s1548_s2 + $0x10] sm:$0x10] }
   0xd   :  { %v280_v0 = vunpack.c.l.b16 %v170_v55  ;;  %v163_v2 = vpack.c.bf16 %v112_v59, %v112_v59  ;;  %v64_v3 = vrot.slane %v865_v52, 4  ;;  %v106_v6 = vrot.slane %v878_v53, 4 }
   0xe   :  { %261 = vrot.lane.b32.xlu1 %v1132_v54, %s962_s13  ;;  %v287_v7 = vpack.c.b16 %v279_v49, %v278_v48  ;;  %v250_v8 = vunpack.c.l.b16 %v164_v61  ;;  %v165_v10 = vpack.c.bf16 %v1140_v58, %v1140_v58  ;;  %v1161_v13 = vsel %vm55_vm0, %v863_v62, %v63_v63 }
   0xf   :  { %v249_v11 = vunpack.c.l.b16 %v163_v2  ;;  %v1158_v12 = vsel %vm55_vm0, %v63_v63, %v64_v3  ;;  %v1175_v18 = vsel %vm55_vm0, %v883_v1, %v135_v60  ;;  %v1178_v20 = vadd.f32 %v112_v59, %v1161_v13 }
  0x10   :  { %v1181_v21 = vadd.f32 %v101_v57, %v1158_v12  ;;  %v1184_v22 = vsel %vm55_vm0, %v877_v4, %v106_v6  ;;  %v288_v28 = vpack.c.b16 %v281_v56, %v280_v0  ;;  %v251_v33 = vunpack.c.l.b16 %v165_v10  ;;  %v945_v10 = vld [vmem:[%s1548_s2 + $0x8] sm:$0xff] }
  0x11   :  { %v1192_v29 = vpack.c.b16 %v250_v8, %v249_v11  ;;  %v166_v30 = vpack.c.bf16 %v1184_v22, %v1184_v22  ;;  %v142_v34 = vrot.slane %v888_v16, 4  ;;  %v174_v35 = vpack.c.bf16 %v1166_v15, %v1166_v15  ;;  %v944_v11 = vld [vmem:[%s1548_s2] sm:$0xff] }
  0x12   :  { %v136_v36 = vrot.slane %v885_v17, 4  ;;  %v172_v40 = vpack.c.bf16 %v1175_v18, %v1175_v18  ;;  %v143_v41 = vrot.slane %v889_v25, 4  ;;  %v107_v43 = vrot.slane %v879_v27, 4 }
  0x13   :  { %292 = vrot.lane.b32.xlu0 %v287_v7, %s963_s19  ;;  %263 = vrot.lane.b32.xlu2 %v1192_v29, %s962_s13  ;;  %v252_v39 = vunpack.c.l.b16 %v166_v30  ;;  %v1213_v46 = vsel %vm55_vm0, %v887_v32, %v142_v34  ;;  %v284_v49 = vunpack.c.l.b16 %v174_v35  ;;  %v901_v59 = vor.u32 %v946_v45, %v900_v44  ;;  %v868_v45 = vld [vmem:[%s1547_s0 + $0x50] sm:$0xff] }
  0x14   :  { %v1216_v47 = vsel %vm55_vm0, %v135_v60, %v136_v36  ;;  %v175_v48 = vpack.c.bf16 %v1213_v46, %v1213_v46  ;;  %v282_v53 = vunpack.c.l.b16 %v172_v40  ;;  %v1226_v56 = vsel %vm55_vm0, %v142_v34, %v143_v41 }
  0x15   :  { %v173_v52 = vpack.c.bf16 %v1216_v47, %v1216_v47  ;;  %v1223_v55 = vpack.c.b16 %v252_v39, %v251_v33  ;;  %v1229_v57 = vsel %vm55_vm0, %v106_v6, %v107_v43  ;;  %v176_v62 = vpack.c.bf16 %v1226_v56, %v1226_v56 }
  0x16   :  { %294 = vrot.lane.b32.xlu1 %v288_v28, %s963_s19  ;;  %v285_v60 = vunpack.c.l.b16 %v175_v48  ;;  %v167_v63 = vpack.c.bf16 %v1229_v57, %v1229_v57  ;;  %v359_v3 = vsel %vm357_vm1, %v901_v59, 0  ;;  %v150_v16 = vpack.c.bf16 %v1032_v5, %v1032_v5  ;;  %v867_v59 = vld [vmem:[%s1547_s0 + $0x48] sm:$0xf] }
  0x17   :  { %v283_v61 = vunpack.c.l.b16 %v173_v52  ;;  %v286_v2 = vunpack.c.l.b16 %v176_v62  ;;  %366 = vmatpush.bf16.msra.mxu0 %v359_v3  ;;  %579 = vmatpush.bf16.msra.mxu2 %v359_v3  ;;  %v152_v34 = vpack.c.bf16 %v1105_v42, %v1105_v42  ;;  %v153_v5 = vpack.c.bf16 %v1089_v31, %v1089_v31 }
  0x18   :  { %v1235_v0 = vpack.c.b16 %v285_v60, %v284_v49  ;;  %v253_v4 = vunpack.c.l.b16 %v167_v63  ;;  %v222_v25 = vunpack.c.l.b16 %v150_v16  ;;  %v154_v44 = vpack.c.bf16 %v1161_v13, %v1161_v13  ;;  %v1288_v13 = vld [vmem:[%s1547_s0 + $0x40] sm:$0xff] }
  0x19   :  { %v1237_v1 = vpack.c.b16 %v283_v61, %v282_v53  ;;  %v1245_v6 = vpack.c.b16 %v286_v2, %v286_v2  ;;  %v224_v35 = vunpack.c.l.b16 %v152_v34  ;;  %v225_v36 = vunpack.c.l.b16 %v153_v5 }
  0x1a   :  { %v1247_v8 = vpack.c.b16 %v253_v4, %v253_v4  ;;  %v155_v42 = vpack.c.bf16 %v1158_v12, %v1158_v12  ;;  %v226_v48 = vunpack.c.l.b16 %v154_v44  ;;  %v70_v52 = vrot.slane %v868_v45, 4 }
  0x1b   :  { %265 = vrot.lane.b32.xlu0 %v1223_v55, %s962_s13  ;;  %296 = vrot.lane.b32.xlu2 %v1237_v1, %s963_s19  ;;  %v232_v39 = vpack.c.b16 %v225_v36, %v224_v35  ;;  %v156_v62 = vpack.c.bf16 %v1288_v13, %v1288_v13  ;;  %v948_v36 = vld [vmem:[%s1551_s4 + $0x8] sm:$0xff] }
  0x1c   :  { %367 = vmatpush.bf16.msra.mxu0 %v945_v10  ;;  %580 = vmatpush.bf16.msra.mxu2 %v945_v10  ;;  %v227_v49 = vunpack.c.l.b16 %v155_v42  ;;  %v1291_v12 = vsel %vm55_vm0, %v867_v59, %v70_v52  ;;  %v869_v10 = vld [vmem:[%s1547_s0 + $0x58] sm:$0xf] }
  0x1d   :  { %v157_v63 = vpack.c.bf16 %v1291_v12, %v1291_v12  ;;  %v228_v3 = vunpack.c.l.b16 %v156_v62  ;;  %v71_v16 = vrot.slane %v869_v10, 4  ;;  %442 = vmatpush.bf16.msra.mxu1 %v948_v36  ;;  %642 = vmatpush.bf16.msra.mxu3 %v948_v36 }
  0x1e   :  { %298 = vrot.lane.b32.xlu1 %v1235_v0, %s963_s19  ;;  %v233_v53 = vpack.c.b16 %v227_v49, %v226_v48 }
  0x1f   :  { %v229_v4 = vunpack.c.l.b16 %v157_v63 }
  0x20   :  { %368 = vmatpush.bf16.msra.mxu0 %v944_v11  ;;  %581 = vmatpush.bf16.msra.mxu2 %v944_v11 }
  0x21   :  { %v234_v11 = vpack.c.b16 %v229_v4, %v228_v3 }
  0x23   :  { %300 = vrot.lane.b32.xlu0 %v1245_v6, %s963_s19  ;;  %267 = vrot.lane.b32.xlu2 %v1247_v8, %s962_s13 }
  0x26   :  { %496 = vrot.lane.b32.xlu1 %v287_v7, %s962_s13  ;;  %v151_v7 = vpack.c.bf16 %v1062_v19, %v1062_v19 }
  0x28   :  { %v223_v27 = vunpack.c.l.b16 %v151_v7 }
  0x2b   :  { %498 = vrot.lane.b32.xlu0 %v288_v28, %s962_s13  ;;  %v231_v28 = vpack.c.b16 %v223_v27, %v222_v25  ;;  %v1305_v27 = vsel %vm55_vm0, %v70_v52, %v71_v16 }
  0x6d   :  { %v264_v31 = vpop.permute.xlu2 %263 }
  0x6e   :  { %v311_v60 = vsel %vm302_vm2, %v233_v53, %v264_v31 }
  0x75   :  { %v297_v61 = vpop.permute.xlu2 %296 }
  0x76   :  { %v324_v2 = vsel %vm318_vm3, %v311_v60, %v297_v61 }
  0x7d   :  { %v260_v17 = vpop.permute.xlu0 %259  ;;  %v268_v34 = vpop.permute.xlu2 %267 }
  0x7e   :  { %v305_v30 = vsel %vm302_vm2, %v231_v28, %v260_v17 }
  0x80   :  { %v262_v19 = vpop.permute.xlu1 %261 }
  0x81   :  { %v308_v40 = vsel %vm302_vm2, %v232_v39, %v262_v19  ;;  %v947_v39 = vld [vmem:[%s1551_s4] sm:$0xff] }
  0x82   :  { %443 = vmatpush.bf16.msra.mxu1 %v947_v39  ;;  %643 = vmatpush.bf16.msra.mxu3 %v947_v39  ;;  %v1342_v39 = vld [vmem:[%s1550_s5] ss:$0 sm:$0xff] }
  0x85   :  { %v293_v32 = vpop.permute.xlu0 %292 }
  0x86   :  { %v320_v33 = vsel %vm318_vm3, %v305_v30, %v293_v32  ;;  %v158_v30 = vpack.c.bf16 %v1305_v27, %v1305_v27 }
  0x87   :  { %902 = vmatmul.msk.bf16.vlgmr.msra.gmra.mxu0 %vm346_vm4, %v320_v33 }
  0x88   :  { %v295_v41 = vpop.permute.xlu1 %294  ;;  %v230_v32 = vunpack.c.l.b16 %v158_v30 }
  0x89   :  { %v322_v43 = vsel %vm318_vm3, %v308_v40, %v295_v41  ;;  %v1323_v41 = vld [vmem:[%s1549_s3] ss:$0 sm:$0xff] }
  0x8a   :  { %v235_v33 = vpack.c.b16 %v230_v32, %v230_v32 }
  0x8c   :  { %v317_v5 = vsel %vm302_vm2, %v235_v33, %v268_v34 }
  0x8d   :  { %v266_v7 = vpop.permute.xlu0 %265 }
  0x8e   :  { %v314_v17 = vsel %vm302_vm2, %v234_v11, %v266_v7 }
  0x90   :  { %v299_v25 = vpop.permute.xlu1 %298 }
  0x91   :  { %v326_v28 = vsel %vm318_vm3, %v314_v17, %v299_v25 }
  0x95   :  { %v301_v19 = vpop.permute.xlu0 %300 }
  0x96   :  { %v328_v35 = vsel %vm318_vm3, %v317_v5, %v301_v19 }
  0x97   :  { %903 = vmatmul.msk.bf16.gmra.mxu0 %vm346_vm4, %v322_v43 }
  0xa7   :  { %904 = vmatmul.msk.bf16.gmra.mxu0 %vm346_vm4, %v324_v2 }
  0xb7   :  { %905 = vmatmul.msk.bf16.gmra.mxu0 %vm346_vm4, %v326_v28 }
  0xc7   :  { %906 = vmatmul.msk.bf16.gmra.mxu0 %vm346_vm4, %v328_v35 }
 0x104   :  { %v370_v40 = vpop.f32.mrf.mxu0 }
 0x105   :  { %v371_v43 = vadd.f32 %v1323_v41, %v370_v40 }
 0x107   :  { %v394_v31 = vmax.f32 %v371_v43, 0.0 }
 0x10c   :  { %v372_v44 = vpop.f32.mrf.mxu0 }
 0x10d   :  { %v373_v42 = vadd.f32 %v1323_v41, %v372_v44 }
 0x10f   :  { %v395_v45 = vmax.f32 %v373_v42, 0.0 }
 0x111   :  { %v403_v48 = vpack.c.bf16 %v395_v45, %v394_v31 }
 0x113   :  { %915 = vmatmul.msk.bf16.vlgmr.msra.gmra.mxu1 %vm420_vm5, %v403_v48 }
 0x114   :  { %v375_v49 = vpop.f32.mrf.mxu0 }
 0x115   :  { %v376_v52 = vadd.f32 %v1323_v41, %v375_v49 }
 0x117   :  { %v396_v60 = vmax.f32 %v376_v52, 0.0 }
 0x11c   :  { %v377_v53 = vpop.f32.mrf.mxu0 }
 0x11d   :  { %v378_v59 = vadd.f32 %v1323_v41, %v377_v53 }
 0x11f   :  { %v397_v61 = vmax.f32 %v378_v59, 0.0 }
 0x121   :  { %v404_v62 = vpack.c.bf16 %v397_v61, %v396_v60 }
 0x123   :  { %916 = vmatmul.msk.bf16.gmra.mxu1 %vm420_vm5, %v404_v62 }
 0x124   :  { %v380_v63 = vpop.f32.mrf.mxu0 }
 0x125   :  { %v381_v2 = vadd.f32 %v1323_v41, %v380_v63 }
 0x127   :  { %v398_v10 = vmax.f32 %v381_v2, 0.0 }
 0x12c   :  { %v382_v3 = vpop.f32.mrf.mxu0 }
 0x12d   :  { %v383_v4 = vadd.f32 %v1323_v41, %v382_v3 }
 0x12f   :  { %v399_v11 = vmax.f32 %v383_v4, 0.0 }
 0x131   :  { %v405_v16 = vpack.c.bf16 %v399_v11, %v398_v10 }
 0x133   :  { %917 = vmatmul.msk.bf16.gmra.mxu1 %vm420_vm5, %v405_v16 }
 0x134   :  { %v385_v7 = vpop.f32.mrf.mxu0 }
 0x135   :  { %v386_v17 = vadd.f32 %v1323_v41, %v385_v7 }
 0x137   :  { %v400_v28 = vmax.f32 %v386_v17, 0.0 }
 0x13c   :  { %v387_v25 = vpop.f32.mrf.mxu0 }
 0x13d   :  { %v388_v30 = vadd.f32 %v1323_v41, %v387_v25 }
 0x13f   :  { %v401_v32 = vmax.f32 %v388_v30, 0.0 }
 0x141   :  { %v406_v33 = vpack.c.bf16 %v401_v32, %v400_v28 }
 0x143   :  { %918 = vmatmul.msk.bf16.gmra.mxu1 %vm420_vm5, %v406_v33 }
 0x144   :  { %v390_v34 = vpop.f32.mrf.mxu0 }
 0x145   :  { %v391_v5 = vadd.f32 %v1323_v41, %v390_v34 }
 0x147   :  { %v402_v19 = vmax.f32 %v391_v5, 0.0 }
 0x149   :  { %v407_v36 = vpack.c.bf16 %v402_v19, %v402_v19 }
 0x14c   :  { %v392_v35 = vpop.f32.mrf.mxu0 }
 0x153   :  { %919 = vmatmul.msk.bf16.gmra.mxu1 %vm420_vm5, %v407_v36 }
 0x190   :  { %v445_v40 = vpop.f32.mrf.mxu1 }
 0x191   :  { %v446_v43 = vadd.f32 %v1342_v39, %v445_v40 }
 0x193   :  { %v1346_v44 = vadd.f32 %v446_v43, %v1053_v14 }
 0x195   :  { %v487_v48 = vpack.c.bf16 %v1346_v44, %v1346_v44 }
 0x197   :  { %v515_v52 = vunpack.c.l.b16 %v487_v48 }
 0x198   :  { %v447_v42 = vpop.f32.mrf.mxu1 }
 0x199   :  { %v448_v31 = vadd.f32 %v1342_v39, %v447_v42 }
 0x19b   :  { %v1350_v45 = vadd.f32 %v448_v31, %v1071_v24 }
 0x19d   :  { %v488_v49 = vpack.c.bf16 %v1350_v45, %v1350_v45 }
 0x19f   :  { %v516_v53 = vunpack.c.l.b16 %v488_v49 }
 0x1a0   :  { %v450_v59 = vpop.f32.mrf.mxu1 }
 0x1a1   :  { %v524_v60 = vpack.c.b16 %v516_v53, %v515_v52  ;;  %v451_v61 = vadd.f32 %v1342_v39, %v450_v59 }
 0x1a3   :  { %529 = vrot.lane.b32.xlu2 %v524_v60, %s963_s19  ;;  %v1359_v62 = vadd.f32 %v451_v61, %v1124_v51 }
 0x1a5   :  { %v489_v4 = vpack.c.bf16 %v1359_v62, %v1359_v62 }
 0x1a7   :  { %v517_v11 = vunpack.c.l.b16 %v489_v4 }
 0x1a8   :  { %v452_v63 = vpop.f32.mrf.mxu1 }
 0x1a9   :  { %v453_v2 = vadd.f32 %v1342_v39, %v452_v63 }
 0x1ab   :  { %v1363_v3 = vadd.f32 %v1079_v26, %v453_v2  ;;  %500 = vrot.lane.b32.xlu2 %v1237_v1, %s962_s13 }
 0x1ad   :  { %v490_v10 = vpack.c.bf16 %v1363_v3, %v1363_v3 }
 0x1af   :  { %v518_v16 = vunpack.c.l.b16 %v490_v10 }
 0x1b0   :  { %v455_v7 = vpop.f32.mrf.mxu1 }
 0x1b1   :  { %v525_v17 = vpack.c.b16 %v518_v16, %v517_v11  ;;  %v456_v25 = vadd.f32 %v1342_v39, %v455_v7  ;;  %v497_v11 = vpop.permute.xlu1 %496 }
 0x1b2   :  { %v541_v16 = vsel %vm302_vm2, %v1100_v38, %v497_v11 }
 0x1b3   :  { %531 = vrot.lane.b32.xlu1 %v525_v17, %s963_s19  ;;  %v1374_v28 = vadd.f32 %v456_v25, %v1175_v18  ;;  %v499_v25 = vpop.permute.xlu0 %498 }
 0x1b5   :  { %v491_v1 = vpack.c.bf16 %v1374_v28, %v1374_v28 }
 0x1b7   :  { %v519_v5 = vunpack.c.l.b16 %v491_v1 }
 0x1b8   :  { %v457_v30 = vpop.f32.mrf.mxu1 }
 0x1b9   :  { %v458_v32 = vadd.f32 %v1342_v39, %v457_v30  ;;  %v544_v30 = vsel %vm302_vm2, %v1132_v54, %v499_v25 }
 0x1bb   :  { %v1378_v33 = vadd.f32 %v458_v32, %v1216_v47  ;;  %502 = vrot.lane.b32.xlu1 %v1235_v0, %s962_s13 }
 0x1bd   :  { %v492_v34 = vpack.c.bf16 %v1378_v33, %v1378_v33 }
 0x1bf   :  { %v520_v19 = vunpack.c.l.b16 %v492_v34 }
 0x1c0   :  { %v460_v35 = vpop.f32.mrf.mxu1 }
 0x1c1   :  { %v461_v36 = vadd.f32 %v1342_v39, %v460_v35  ;;  %v526_v40 = vpack.c.b16 %v520_v19, %v519_v5 }
 0x1c3   :  { %533 = vrot.lane.b32.xlu0 %v526_v40, %s963_s19  ;;  %v1389_v43 = vadd.f32 %v1166_v15, %v461_v36 }
 0x1c5   :  { %v493_v31 = vpack.c.bf16 %v1389_v43, %v1389_v43 }
 0x1c7   :  { %v521_v52 = vunpack.c.l.b16 %v493_v31 }
 0x1c8   :  { %v462_v42 = vpop.f32.mrf.mxu1 }
 0x1c9   :  { %v463_v0 = vadd.f32 %v1342_v39, %v462_v42 }
 0x1cb   :  { %v1395_v48 = vadd.f32 %v463_v0, %v1213_v46  ;;  %504 = vrot.lane.b32.xlu0 %v1245_v6, %s962_s13 }
 0x1cd   :  { %v494_v49 = vpack.c.bf16 %v1395_v48, %v1395_v48 }
 0x1cf   :  { %v522_v53 = vunpack.c.l.b16 %v494_v49  ;;  %v687_v49 = vld [vmem:[%s1552_s1] sm:$0xff] }
 0x1d0   :  { %v465_v59 = vpop.f32.mrf.mxu1 }
 0x1d1   :  { %v527_v60 = vpack.c.b16 %v522_v53, %v521_v52  ;;  %v466_v61 = vadd.f32 %v1342_v39, %v465_v59  ;;  %v964_v52 = vmov 0  }
 0x1d2   :  { %957 = vset.pattern.permute.xlu1 %v964_v52  ;;  %955 = vset.pattern.permute.xlu2 %v964_v52 }
 0x1d3   :  { %535 = vrot.lane.b32.xlu2 %v527_v60, %s963_s19  ;;  %v1404_v63 = vadd.f32 %v466_v61, %v1226_v56  ;;  %956 = vset.pattern.permute.xlu0 %v964_v52 }
 0x1d5   :  { %v495_v2 = vpack.c.bf16 %v1404_v63, %v1404_v63 }
 0x1d7   :  { %v523_v4 = vunpack.c.l.b16 %v495_v2 }
 0x1d8   :  { %v467_v10 = vpop.f32.mrf.mxu1 }
 0x1d9   :  { %v528_v6 = vpack.c.b16 %v523_v4, %v523_v4  ;;  %v688_v4 = vld [vmem:[%s1552_s1 + $0x8] sm:$0xff] }
 0x1db   :  { %537 = vrot.lane.b32.xlu1 %v528_v6, %s963_s19  ;;  %703 = vperm.xlu2 %955, %v688_v4   ;;  %v689_v6 = vld [vmem:[%s1552_s1 + $0x10] sm:$0xff] }
 0x1dc   :  { %708 = vperm.xlu0 %956, %v689_v6   ;;  %v932_v6 = vld [vmem:[%s1554_s6] sm:$0xf] }
 0x1e3   :  { %698 = vperm.xlu1 %957, %v687_v49  }
 0x1fd   :  { %v530_v7 = vpop.permute.xlu2 %529 }
 0x1fe   :  { %v555_v17 = vsel %vm318_vm3, %v541_v16, %v530_v7 }
 0x1ff   :  { %920 = vmatmul.msk.bf16.vlgmr.msra.gmra.mxu2 %vm346_vm4, %v555_v17 }
 0x205   :  { %v501_v34 = vpop.permute.xlu2 %500 }
 0x206   :  { %v547_v5 = vsel %vm302_vm2, %v1192_v29, %v501_v34 }
 0x225   :  { %v532_v32 = vpop.permute.xlu1 %531 }
 0x226   :  { %v557_v1 = vsel %vm318_vm3, %v544_v30, %v532_v32 }
 0x227   :  { %921 = vmatmul.msk.bf16.gmra.mxu2 %vm346_vm4, %v557_v1 }
 0x22d   :  { %v503_v35 = vpop.permute.xlu1 %502  ;;  %v536_v40 = vpop.permute.xlu2 %535 }
 0x22e   :  { %v550_v36 = vsel %vm302_vm2, %v1223_v55, %v503_v35 }
 0x22f   :  { %v561_v54 = vsel %vm318_vm3, %v550_v36, %v536_v40 }
 0x235   :  { %v534_v19 = vpop.permute.xlu0 %533 }
 0x236   :  { %v559_v38 = vsel %vm318_vm3, %v547_v5, %v534_v19  ;;  %v692_v5 = vld [vmem:[%s1552_s1 + $0x28] sm:$0xff]  ;;  %v691_v19 = vld [vmem:[%s1552_s1 + $0x20] sm:$0xff] }
 0x237   :  { %922 = vmatmul.msk.bf16.gmra.mxu2 %vm346_vm4, %v559_v38  ;;  %723 = vperm.xlu1 %957, %v692_v5  }
 0x238   :  { %718 = vperm.xlu2 %955, %v691_v19   ;;  %v188_v19 = vadd.f32 %v1121_v50, %v1124_v51 }
 0x23d   :  { %v505_v42 = vpop.permute.xlu0 %504 }
 0x23e   :  { %v553_v0 = vsel %vm302_vm2, %v1247_v8, %v505_v42  ;;  %v690_v42 = vld [vmem:[%s1552_s1 + $0x18] sm:$0xff] }
 0x240   :  { %713 = vperm.xlu2 %955, %v690_v42  }
 0x247   :  { %923 = vmatmul.msk.bf16.gmra.mxu2 %vm346_vm4, %v561_v54  ;;  %v695_v54 = vld [vmem:[%s1552_s1 + $0x40] sm:$0xff] }
 0x248   :  { %738 = vperm.xlu1 %957, %v695_v54  }
 0x24d   :  { %v538_v31 = vpop.permute.xlu1 %537 }
 0x24e   :  { %v563_v29 = vsel %vm318_vm3, %v553_v0, %v538_v31  ;;  %v694_v0 = vld [vmem:[%s1552_s1 + $0x38] sm:$0xff] }
 0x24f   :  { %733 = vperm.xlu0 %956, %v694_v0  }
 0x255   :  { %v699_v51 = vpop.permute.xlu1 %698 }
 0x257   :  { %924 = vmatmul.msk.bf16.gmra.mxu2 %vm346_vm4, %v563_v29  ;;  %v693_v29 = vld [vmem:[%s1552_s1 + $0x30] sm:$0xff] }
 0x258   :  { %728 = vperm.xlu2 %955, %v693_v29  }
 0x282   :  { %v583_v55 = vpop.f32.mrf.mxu2 }
 0x283   :  { %v584_v53 = vadd.f32 %v1323_v41, %v583_v55 }
 0x285   :  { %v607_v60 = vmax.f32 %v584_v53, 0.0 }
 0x28a   :  { %v585_v59 = vpop.f32.mrf.mxu2 }
 0x28b   :  { %v586_v8 = vadd.f32 %v1323_v41, %v585_v59 }
 0x28d   :  { %v608_v61 = vmax.f32 %v586_v8, 0.0 }
 0x28f   :  { %v616_v2 = vpack.c.bf16 %v608_v61, %v607_v60 }
 0x291   :  { %925 = vmatmul.msk.bf16.vlgmr.msra.gmra.mxu3 %vm420_vm5, %v616_v2 }
 0x2aa   :  { %v588_v10 = vpop.f32.mrf.mxu2 }
 0x2ab   :  { %v589_v11 = vadd.f32 %v1323_v41, %v588_v10 }
 0x2ad   :  { %v609_v17 = vmax.f32 %v589_v11, 0.0  ;;  %v949_v11 = vld [vmem:[%s1554_s6] sm:$0x70] }
 0x2b2   :  { %v590_v16 = vpop.f32.mrf.mxu2 }
 0x2b3   :  { %v591_v7 = vadd.f32 %v1323_v41, %v590_v16  ;;  %v933_v16 = vor.u32 %v949_v11, %v932_v6 }
 0x2b5   :  { %v610_v25 = vmax.f32 %v591_v7, 0.0  ;;  %v798_v7 = vsel %vm796_vm6, %v933_v16, 0 }
 0x2b6   :  { %807 = vmatpush.bf16.msrb.mxu1 %v798_v7 }
 0x2b7   :  { %v617_v30 = vpack.c.bf16 %v610_v25, %v609_v17 }
 0x2b9   :  { %926 = vmatmul.msk.bf16.gmra.mxu3 %vm420_vm5, %v617_v30  ;;  %v704_v30 = vpop.permute.xlu2 %703 }
 0x2ba   :  { %v593_v32 = vpop.f32.mrf.mxu2 }
 0x2bb   :  { %v594_v1 = vadd.f32 %v1323_v41, %v593_v32  ;;  %v187_v32 = vadd.f32 %v1068_v23, %v1071_v24  ;;  %v480_v24 = vadd.f32 %v1359_v62, %v188_v19 }
 0x2bd   :  { %v611_v35 = vmax.f32 %v594_v1, 0.0  ;;  %v479_v5 = vadd.f32 %v1350_v45, %v187_v32 }
 0x2c1   :  { %v719_v42 = vpop.permute.xlu2 %718 }
 0x2c2   :  { %v595_v34 = vpop.f32.mrf.mxu2 }
 0x2c3   :  { %v596_v38 = vadd.f32 %v1323_v41, %v595_v34 }
 0x2c5   :  { %v612_v36 = vmax.f32 %v596_v38, 0.0  ;;  %v186_v38 = vadd.f32 %v1041_v9, %v1053_v14  ;;  %v189_v9 = vadd.f32 %v1079_v26, %v1098_v37 }
 0x2c7   :  { %v618_v40 = vpack.c.bf16 %v612_v36, %v611_v35  ;;  %v478_v0 = vadd.f32 %v1346_v44, %v186_v38 }
 0x2c9   :  { %927 = vmatmul.msk.bf16.gmra.mxu3 %vm420_vm5, %v618_v40 }
 0x2ca   :  { %v598_v31 = vpop.f32.mrf.mxu2 }
 0x2cb   :  { %v599_v49 = vadd.f32 %v1323_v41, %v598_v31 }
 0x2cd   :  { %v613_v53 = vmax.f32 %v599_v49, 0.0 }
 0x2d2   :  { %v600_v52 = vpop.f32.mrf.mxu2 }
 0x2d3   :  { %v601_v55 = vadd.f32 %v1323_v41, %v600_v52 }
 0x2d5   :  { %v614_v59 = vmax.f32 %v601_v55, 0.0 }
 0x2d7   :  { %v619_v8 = vpack.c.bf16 %v614_v59, %v613_v53 }
 0x2d9   :  { %928 = vmatmul.msk.bf16.gmra.mxu3 %vm420_vm5, %v619_v8 }
 0x2da   :  { %v603_v60 = vpop.f32.mrf.mxu2 }
 0x2db   :  { %v604_v61 = vadd.f32 %v1323_v41, %v603_v60 }
 0x2dd   :  { %v615_v2 = vmax.f32 %v604_v61, 0.0  ;;  %v714_v61 = vpop.permute.xlu2 %713 }
 0x2df   :  { %v620_v10 = vpack.c.bf16 %v615_v2, %v615_v2 }
 0x2e2   :  { %v605_v4 = vpop.f32.mrf.mxu2 }
 0x2e9   :  { %929 = vmatmul.msk.bf16.gmra.mxu3 %vm420_vm5, %v620_v10  ;;  %v190_v10 = vadd.f32 %v1178_v20, %v1175_v18  ;;  %v183_v18 = vadd.f32 %v1140_v58, %v1288_v13  ;;  %v950_v58 = vld [vmem:[%s1555_s8] sm:$0xff] }
 0x2eb   :  { %v482_v16 = vadd.f32 %v1374_v28, %v190_v10 }
 0x314   :  { %v645_v17 = vpop.f32.mrf.mxu3 }
 0x315   :  { %v646_v34 = vadd.f32 %v1342_v39, %v645_v17 }
 0x317   :  { %v669_v54 = vadd.f32 %v646_v34, %v1346_v44  ;;  %v481_v44 = vadd.f32 %v1363_v3, %v189_v9  ;;  %v724_v34 = vpop.permute.xlu1 %723 }
 0x319   :  { %v678_v50 = vadd.f32 %v669_v54, %v478_v0  ;;  %v184_v0 = vadd.f32 %v1184_v22, %v1291_v12 }
 0x31b   :  { %v741_v59 = vmul.f32 %v699_v51, %v678_v50  ;;  %v185_v50 = vadd.f32 %v1229_v57, %v1305_v27  ;;  %v193_v51 = vadd.f32 %v184_v0, %v1213_v46 }
 0x31c   :  { %v647_v25 = vpop.f32.mrf.mxu3 }
 0x31d   :  { %v648_v41 = vadd.f32 %v1342_v39, %v647_v25  ;;  %v194_v9 = vadd.f32 %v185_v50, %v1226_v56 }
 0x31f   :  { %v670_v1 = vadd.f32 %v648_v41, %v1350_v45  ;;  %v709_v45 = vpop.permute.xlu0 %708  ;;  %v486_v12 = vadd.f32 %v1404_v63, %v194_v9  ;;  %v739_v57 = vpop.permute.xlu1 %738 }
 0x321   :  { %v679_v36 = vadd.f32 %v670_v1, %v479_v5 }
 0x323   :  { %v742_v31 = vmul.f32 %v704_v30, %v679_v36 }
 0x325   :  { %v752_v52 = vrot.slane %v742_v31, 4 }
 0x327   :  { %v734_v22 = vpop.permute.xlu0 %733 }
 0x33c   :  { %v650_v35 = vpop.f32.mrf.mxu3 }
 0x33d   :  { %v651_v40 = vadd.f32 %v1342_v39, %v650_v35 }
 0x33f   :  { %v671_v23 = vadd.f32 %v651_v40, %v1359_v62 }
 0x341   :  { %v680_v29 = vadd.f32 %v671_v23, %v480_v24  ;;  %v729_v23 = vpop.permute.xlu2 %728 }
 0x343   :  { %v743_v49 = vmul.f32 %v709_v45, %v680_v29 }
 0x344   :  { %v652_v14 = vpop.f32.mrf.mxu3 }
 0x345   :  { %v753_v55 = vrot.slane %v743_v49, 4  ;;  %v653_v53 = vadd.f32 %v1342_v39, %v652_v14 }
 0x347   :  { %v758_v8 = vadd.f32 %v753_v55, %v742_v31  ;;  %v672_v62 = vadd.f32 %v653_v53, %v1363_v3  ;;  %v754_v60 = vsel %vm55_vm0, %v752_v52, %v753_v55  ;;  %v191_v3 = vadd.f32 %v1181_v21, %v1216_v47  ;;  %v951_v21 = vld [vmem:[%s1555_s8 + $0x8] sm:$0xff] }
 0x348   :  { %v757_v2 = vadd.f32 %v754_v60, %v741_v59  ;;  %846 = vmatpush.bf16.msrb.mxu3 %v951_v21 }
 0x349   :  { %v681_v4 = vadd.f32 %v672_v62, %v481_v44  ;;  %v483_v1 = vadd.f32 %v1378_v33, %v191_v3 }
 0x34b   :  { %v744_v26 = vmul.f32 %v714_v61, %v681_v4 }
 0x34c   :  { %v655_v37 = vpop.f32.mrf.mxu3  ;;  %847 = vmatpush.bf16.msrb.mxu3 %v950_v58 }
 0x34d   :  { %v759_v6 = vadd.f32 %v757_v2, %v744_v26  ;;  %v656_v11 = vadd.f32 %v1342_v39, %v655_v37 }
 0x34f   :  { %v673_v7 = vadd.f32 %v656_v11, %v1374_v28  ;;  %v192_v28 = vadd.f32 %v1166_v15, %v183_v18 }
 0x351   :  { %v682_v17 = vadd.f32 %v673_v7, %v482_v16  ;;  %v484_v40 = vadd.f32 %v1389_v43, %v192_v28  ;;  %v961_v16 = vld [vmem:[%s1556_s9] ss:$0 sm:$0xff] }
 0x353   :  { %v745_v25 = vmul.f32 %v719_v42, %v682_v17 }
 0x354   :  { %v657_v41 = vpop.f32.mrf.mxu3 }
 0x355   :  { %v658_v30 = vadd.f32 %v1342_v39, %v657_v41  ;;  %v760_v32 = vadd.f32 %v758_v8, %v745_v25  ;;  %v763_v47 = vrot.slane %v745_v25, 4 }
 0x357   :  { %v674_v20 = vadd.f32 %v658_v30, %v1378_v33 }
 0x359   :  { %v683_v5 = vadd.f32 %v674_v20, %v483_v1 }
 0x35b   :  { %v746_v19 = vmul.f32 %v724_v34, %v683_v5 }
 0x35c   :  { %v660_v38 = vpop.f32.mrf.mxu3 }
 0x35d   :  { %v764_v35 = vrot.slane %v746_v19, 4  ;;  %v661_v36 = vadd.f32 %v1342_v39, %v660_v38 }
 0x35f   :  { %v765_v13 = vsel %vm55_vm0, %v763_v47, %v764_v35  ;;  %v769_v33 = vadd.f32 %v764_v35, %v760_v32  ;;  %v675_v15 = vadd.f32 %v661_v36, %v1389_v43  ;;  %v485_v43 = vadd.f32 %v1395_v48, %v193_v51 }
 0x360   :  { %v768_v54 = vadd.f32 %v765_v13, %v759_v6 }
 0x361   :  { %v684_v42 = vadd.f32 %v675_v15, %v484_v40 }
 0x363   :  { %v747_v24 = vmul.f32 %v729_v23, %v684_v42 }
 0x364   :  { %v662_v45 = vpop.f32.mrf.mxu3 }
 0x365   :  { %v770_v31 = vadd.f32 %v768_v54, %v747_v24  ;;  %v663_v29 = vadd.f32 %v1342_v39, %v662_v45 }
 0x367   :  { %v676_v49 = vadd.f32 %v663_v29, %v1395_v48 }
 0x369   :  { %v685_v52 = vadd.f32 %v676_v49, %v485_v43 }
 0x36b   :  { %v748_v59 = vmul.f32 %v734_v22, %v685_v52 }
 0x36c   :  { %v665_v14 = vpop.f32.mrf.mxu3 }
 0x36d   :  { %v666_v55 = vadd.f32 %v1342_v39, %v665_v14  ;;  %v771_v62 = vadd.f32 %v769_v33, %v748_v59  ;;  %v774_v44 = vrot.slane %v748_v59, 4 }
 0x36f   :  { %v677_v53 = vadd.f32 %v666_v55, %v1404_v63  ;;  %v960_v63 = vld [vmem:[%s1553_s7] ss:$0 sm:$0xff] }
 0x371   :  { %v686_v8 = vadd.f32 %v677_v53, %v486_v12 }
 0x373   :  { %v749_v27 = vmul.f32 %v739_v57, %v686_v8 }
 0x374   :  { %v667_v46 = vpop.f32.mrf.mxu3 }
 0x375   :  { %v775_v60 = vrot.slane %v749_v27, 4 }
 0x377   :  { %v780_v48 = vadd.f32 %v775_v60, %v771_v62  ;;  %v776_v56 = vsel %vm55_vm0, %v774_v44, %v775_v60 }
 0x378   :  { %v779_v61 = vadd.f32 %v776_v56, %v770_v31 }
 0x37a   :  { %v781_v2 = vpack.c.bf16 %v780_v48, %v779_v61 }
 0x37c   :  { %934 = vmatmul.msk.bf16.vlgmr.msrb.gmra.mxu1 %vm302_vm2, %v781_v2 }
 0x3f9   :  { %v809_v39 = vpop.f32.mrf.mxu1 }
 0x3fa   :  { %v810_v4 = vadd.f32 %v960_v63, %v809_v39 }
 0x3fc   :  { %v814_v37 = vmax.f32 %v810_v4, 0.0 }
 0x401   :  { %v811_v10 = vpop.f32.mrf.mxu1 }
 0x402   :  { %v812_v26 = vadd.f32 %v960_v63, %v811_v10 }
 0x404   :  { %v815_v6 = vmax.f32 %v812_v26, 0.0 }
 0x406   :  { %v816_v11 = vpack.c.bf16 %v815_v6, %v814_v37 }
 0x408   :  { %943 = vmatmul.msk.bf16.vlgmr.msrb.gmra.mxu3 %vm420_vm5, %v816_v11 }
 0x48b   :  { %v849_v7 = vpop.f32.mrf.mxu3 }
 0x48c   :  { %v850_v17 = vadd.f32 %v961_v16, %v849_v7 }
 0x48e   :  { %854 = vst [vmem:[%s1557_s10] sm:$0xff] %v850_v17 }
 0x493   :  { %v851_v25 = vpop.f32.mrf.mxu3 }
 0x494   :  { %v852_v3 = vadd.f32 %v961_v16, %v851_v25 }
 0x496   :  { %855 = vst [vmem:[%s1557_s10 + $0x8] sm:$0xf] %v852_v3 }

</bundles_post_ra>
